<compile_context>
chip_gen: v7x
topology: tpu7x:2x2x1
jax: 0.10.0
libtpu: 0.0.40
codegen_flags: <defaults>
</compile_context>

<pallas_src>
import jax
import jax.numpy as jnp
from jax import lax
from jax.experimental import pallas as pl
from jax.experimental.pallas import tpu as pltpu


LANES = 128                 # vreg lane width
_TARGET_BLOCK_ROWS = 1024   # ~(4+2)*1024*128*4 B = 3 MiB of tiles/step (x2 buffered)
_ROW_CHUNK = 32             # sublane rows per inner chunk (vreg-pressure bound)
_CHUNK_UNROLL = 2           # fori_loop unroll factor for the chunk loop


def _cdiv(a, b):
    return -(-a // b)


def _round_up(n, m):
    return _cdiv(n, m) * m


def _default_mac_dtype():
    """bf16 MAC path on chips with a packed-bf16 VPU (v6e/v7x); f32 otherwise."""
    try:
        kind = jax.devices()[0].device_kind.lower()
    except Exception:
        return jnp.float32
    if "v6" in kind or "v7" in kind:
        return jnp.bfloat16
    return jnp.float32


def _plan_blocks(n_rows, target_rows):
    """Pick (block_rows, row_chunk, grid_len) for a lane-dense batch of n_rows."""
    n_steps = max(1, _cdiv(n_rows, max(8, target_rows)))
    if n_rows > 8:
        # Always give the "parallel" batch axis >= 2 (even) steps so both v7x
        # TensorCores get work; on single-TC chips an extra step costs ~0.35 us.
        n_steps = max(n_steps, 2)
        if n_steps % 2:
            n_steps += 1
    block_rows = _round_up(_cdiv(n_rows, n_steps), 8)
    row_chunk = _ROW_CHUNK
    while block_rows % row_chunk:       # block_rows is a multiple of 8 -> terminates
        row_chunk //= 2
    grid_len = _cdiv(n_rows, block_rows)
    return block_rows, row_chunk, grid_len


def _pack_weight_rows(w1, b1, w2, mac_dtype):
    """Pack every scalar weight as a [1, 128] lane-broadcast row (order w1|b1|w2)."""
    flat = jnp.concatenate(
        [w1.reshape(-1), b1.reshape(-1), w2.reshape(-1)]).astype(jnp.float32)
    n_pad = _round_up(flat.shape[0], 8)
    flat = jnp.pad(flat, (0, n_pad - flat.shape[0]))
    return jnp.broadcast_to(flat[:, None], (n_pad, LANES)).astype(mac_dtype)


def _make_dqn_kernel(state_dim, hidden, action_dim, row_chunk, n_chunks, mac_dtype):
    w1_off = 0
    b1_off = state_dim * hidden
    w2_off = b1_off + hidden

    def kernel(x_ref, wrow_ref, b2_ref, o_ref):
        # x_ref:    [state_dim, block_rows, 128]   VMEM (batch on sublanes x lanes)
        # wrow_ref: [n_w_rows, 128] mac_dtype      VMEM, resident across all steps
        # b2_ref:   [action_dim] f32               SMEM (output bias added in f32)
        # o_ref:    [action_dim, block_rows, 128]  VMEM
        def wrow(i):                               # [1, 128] weight operand
            return wrow_ref[pl.ds(i, 1), :]

        # Hoist loop-invariant SMEM scalar reads out of the chunk loop.
        b2 = [b2_ref[c] for c in range(action_dim)]

        def chunk_body(r, carry):
            start = r * row_chunk
            if not isinstance(start, int):
                start = pl.multiple_of(start, row_chunk)
            rows = pl.ds(start, row_chunk)
            # Full-lane-width loads of the state features for this row chunk,
            # cast once to the MAC dtype (no-op in the f32 path).
            xs = [x_ref[j, rows, :].astype(mac_dtype) for j in range(state_dim)]

            accs = [None] * action_dim
            for k in range(hidden):
                # fc1, hidden unit k: unrolled VPU MACs ([ch,128] * [1,128]).
                h = xs[0] * wrow(w1_off + k)
                for j in range(1, state_dim):
                    h = h + xs[j] * wrow(w1_off + j * hidden + k)
                h = jnp.maximum(h + wrow(b1_off + k), 0.0)          # bias + ReLU
                # fc2: fold this hidden unit straight into the f32 action
                # accumulators so only a handful of [ch,128] tiles stay live.
                for c in range(action_dim):
                    t = h * wrow(w2_off + k * action_dim + c)
                    accs[c] = (t.astype(jnp.float32) if accs[c] is None
                               else accs[c] + t)                    # f32 accumulate
            for c in range(action_dim):
                o_ref[c, rows, :] = (accs[c] + b2[c]).astype(o_ref.dtype)
            return carry

        if n_chunks == 1:
            chunk_body(0, 0)
        else:
            lax.fori_loop(0, n_chunks, chunk_body, 0,
                          unroll=min(_CHUNK_UNROLL, n_chunks))

    return kernel


def cartpole_dqn_forward_feature_major(x_fm, w1, b1, w2, b2, *,
                                       target_block_rows=_TARGET_BLOCK_ROWS,
                                       mac_dtype=None):
    """Forward pass with feature-major I/O (no wrapper transposes).

    x_fm: [state_dim, B]  ->  [action_dim, B]
    """
    state_dim, B = x_fm.shape
    hidden = w1.shape[1]
    action_dim = w2.shape[1]
    assert w1.shape == (state_dim, hidden)
    assert b1.shape == (hidden,)
    assert w2.shape == (hidden, action_dim)
    assert b2.shape == (action_dim,)
    if mac_dtype is None:
        mac_dtype = _default_mac_dtype()

    n_rows = max(1, _cdiv(B, LANES))
    block_rows, row_chunk, grid_len = _plan_blocks(n_rows, target_block_rows)
    n_rows_pad = grid_len * block_rows
    b_pad = n_rows_pad * LANES

    # Single pad op on the lane axis (no transpose); lane-dense [S, rows, 128].
    xt = jnp.pad(x_fm, ((0, 0), (0, b_pad - B))).reshape(state_dim, n_rows_pad, LANES)

    wrows = _pack_weight_rows(w1, b1, w2, mac_dtype)
    b2_f32 = b2.astype(jnp.float32)

    kernel = _make_dqn_kernel(state_dim, hidden, action_dim,
                              row_chunk, block_rows // row_chunk, mac_dtype)

    # VMEM budget: in/out tiles are double-buffered; default scoped limits
    # (16/32 MiB) cover the default 1024-row target, so only raise when needed.
    itemsize = jnp.dtype(x_fm.dtype).itemsize
    tile_bytes = (state_dim + action_dim) * block_rows * LANES * itemsize
    vmem_need = 2 * tile_bytes + 2 * wrows.size * wrows.dtype.itemsize + (1 << 20)
    vmem_limit = int(vmem_need + (4 << 20)) if vmem_need > (12 << 20) else None

    out_t = pl.pallas_call(
        kernel,
        out_shape=jax.ShapeDtypeStruct((action_dim, n_rows_pad, LANES), x_fm.dtype),
        grid=(grid_len,),
        in_specs=[
            pl.BlockSpec((state_dim, block_rows, LANES), lambda i: (0, i, 0)),
            pl.BlockSpec(wrows.shape, lambda i: (0, 0)),   # resident weight rows
            pl.BlockSpec(memory_space=pltpu.MemorySpace.SMEM),
        ],
        out_specs=pl.BlockSpec((action_dim, block_rows, LANES), lambda i: (0, i, 0)),
        compiler_params=pltpu.CompilerParams(
            dimension_semantics=("parallel",),   # batch axis -> megacore on v7x
            vmem_limit_bytes=vmem_limit,
        ),
    )(xt, wrows, b2_f32)

    # [A, rows, 128] -> [A, B]  (contiguous reshape + slice; no transpose)
    return out_t.reshape(action_dim, b_pad)[:, :B]


def cartpole_dqn_forward(x, w1, b1, w2, b2, **kwargs):
    """PyTorch-layout forward: x [B, state_dim] -> [B, action_dim]."""
    out_fm = cartpole_dqn_forward_feature_major(x.T, w1, b1, w2, b2, **kwargs)
    return out_fm.T


def init_params(key, state_dim, action_dim, hidden=12, dtype=jnp.float32):
    """Deterministic PyTorch-style Linear init (uniform +/- 1/sqrt(fan_in))."""
    k1, k2, k3, k4 = jax.random.split(key, 4)
    bound1 = 1.0 / (state_dim ** 0.5)
    bound2 = 1.0 / (hidden ** 0.5)
    w1 = jax.random.uniform(k1, (state_dim, hidden), dtype, -bound1, bound1)
    b1 = jax.random.uniform(k2, (hidden,), dtype, -bound1, bound1)
    w2 = jax.random.uniform(k3, (hidden, action_dim), dtype, -bound2, bound2)
    b2 = jax.random.uniform(k4, (action_dim,), dtype, -bound2, bound2)
    return w1, b1, w2, b2


def _ref_forward(x, w1, b1, w2, b2):
    return jnp.maximum(x @ w1 + b1, 0.0) @ w2 + b2


if __name__ == "__main__":
    key = jax.random.PRNGKey(0)
    kx, kp, kx2, kx3 = jax.random.split(key, 4)

    # CartPole-like sizes: state_dim=4, action_dim=2, hidden=12, batch=2.
    B, state_dim, action_dim, hidden = 2, 4, 2, 12
    x = jax.random.normal(kx, (B, state_dim), dtype=jnp.float32)
    w1, b1, w2, b2 = init_params(kp, state_dim, action_dim, hidden)
    ref = _ref_forward(x, w1, b1, w2, b2)

    # 1) Exact f32 MAC path (tight tolerance vs. the dense reference).
    out = cartpole_dqn_forward(x, w1, b1, w2, b2, mac_dtype=jnp.float32)
    jax.block_until_ready(out)
    assert out.shape == (B, action_dim)
    assert jnp.allclose(out, ref, atol=1e-5, rtol=1e-5)

    # 2) bf16 MAC path (f32 accumulation) - the v6e/v7x fast path; loose Q tolerance.
    out_bf = cartpole_dqn_forward(x, w1, b1, w2, b2, mac_dtype=jnp.bfloat16)
    jax.block_until_ready(out_bf)
    assert jnp.allclose(out_bf, ref, atol=1.5e-1, rtol=1e-1)

    # 3) Batched path: >=2 parallel grid steps, multi-chunk fori_loop, tail padding,
    #    auto MAC dtype for this chip.
    B2 = 20000
    x2 = jax.random.normal(kx2, (B2, state_dim), dtype=jnp.float32)
    out2 = cartpole_dqn_forward(x2, w1, b1, w2, b2)
    jax.block_until_ready(out2)
    ref2 = _ref_forward(x2, w1, b1, w2, b2)
    assert out2.shape == (B2, action_dim)
    if _default_mac_dtype() == jnp.float32:
        assert jnp.allclose(out2, ref2, atol=1e-5, rtol=1e-5)
    else:
        assert jnp.allclose(out2, ref2, atol=2e-1, rtol=1e-1)

    # 4) Feature-major entry point (zero wrapper transposes).
    B3 = 3000
    x3 = jax.random.normal(kx3, (B3, state_dim), dtype=jnp.float32)
    out3 = cartpole_dqn_forward_feature_major(x3.T, w1, b1, w2, b2,
                                              mac_dtype=jnp.float32)
    jax.block_until_ready(out3)
    ref3 = _ref_forward(x3, w1, b1, w2, b2)
    assert out3.shape == (action_dim, B3)
    assert jnp.allclose(out3.T, ref3, atol=1e-5, rtol=1e-5)

    print("KERNEL_OK")
</pallas_src>

<mosaic_0001>
module attributes {stable_mosaic.version = 11 : i64} {
  func.func @kernel(%arg0: i32, %arg1: memref<4x8x128xf32, #tpu.memory_space<vmem>>, %arg2: memref<88x128xf32, #tpu.memory_space<vmem>>, %arg3: memref<2xf32, #tpu.memory_space<smem>>, %arg4: memref<2x8x128xf32, #tpu.memory_space<vmem>>) attributes {dimension_semantics = [#tpu.dimension_semantics<parallel>], iteration_bounds = array<i64: 1>, scalar_prefetch = 0 : i64, scratch_operands = 0 : i64, tpu.core_type = #tpu.core_type<tc>, window_params = [{transform_indices = @transform_0, window_bounds = array<i64: 4, 8, 128>}, {pipeline_mode = #tpu.pipeline_mode<synchronous>, transform_indices = @transform_1, window_bounds = array<i64: 88, 128>}, {transform_indices = @transform_2, window_bounds = array<i64: 2>}, {transform_indices = @transform_3, window_bounds = array<i64: 2, 8, 128>}]} {
    %c0 = arith.constant 0 : index
    %0 = memref.load %arg3[%c0] : memref<2xf32, #tpu.memory_space<smem>>
    %c1 = arith.constant 1 : index
    %1 = memref.load %arg3[%c1] : memref<2xf32, #tpu.memory_space<smem>>
    %c0_0 = arith.constant 0 : index
    %c0_1 = arith.constant 0 : index
    %c0_2 = arith.constant 0 : index
    %2 = vector.load %arg1[%c0_0, %c0_1, %c0_2] : memref<4x8x128xf32, #tpu.memory_space<vmem>>, vector<1x8x128xf32>
    %3 = vector.shape_cast %2 : vector<1x8x128xf32> to vector<8x128xf32>
    %c1_3 = arith.constant 1 : index
    %c0_4 = arith.constant 0 : index
    %c0_5 = arith.constant 0 : index
    %4 = vector.load %arg1[%c1_3, %c0_4, %c0_5] : memref<4x8x128xf32, #tpu.memory_space<vmem>>, vector<1x8x128xf32>
    %5 = vector.shape_cast %4 : vector<1x8x128xf32> to vector<8x128xf32>
    %c2 = arith.constant 2 : index
    %c0_6 = arith.constant 0 : index
    %c0_7 = arith.constant 0 : index
    %6 = vector.load %arg1[%c2, %c0_6, %c0_7] : memref<4x8x128xf32, #tpu.memory_space<vmem>>, vector<1x8x128xf32>
    %7 = vector.shape_cast %6 : vector<1x8x128xf32> to vector<8x128xf32>
    %c3 = arith.constant 3 : index
    %c0_8 = arith.constant 0 : index
    %c0_9 = arith.constant 0 : index
    %8 = vector.load %arg1[%c3, %c0_8, %c0_9] : memref<4x8x128xf32, #tpu.memory_space<vmem>>, vector<1x8x128xf32>
    %9 = vector.shape_cast %8 : vector<1x8x128xf32> to vector<8x128xf32>
    %c0_10 = arith.constant 0 : index
    %c0_11 = arith.constant 0 : index
    %10 = vector.load %arg2[%c0_10, %c0_11] : memref<88x128xf32, #tpu.memory_space<vmem>>, vector<1x128xf32>
    %11 = vector.broadcast %10 : vector<1x128xf32> to vector<8x128xf32>
    %12 = arith.mulf %3, %11 : vector<8x128xf32>
    %c12 = arith.constant 12 : index
    %c0_12 = arith.constant 0 : index
    %13 = vector.load %arg2[%c12, %c0_12] : memref<88x128xf32, #tpu.memory_space<vmem>>, vector<1x128xf32>
    %14 = vector.broadcast %13 : vector<1x128xf32> to vector<8x128xf32>
    %15 = arith.mulf %5, %14 : vector<8x128xf32>
    %16 = arith.addf %12, %15 : vector<8x128xf32>
    %c24 = arith.constant 24 : index
    %c0_13 = arith.constant 0 : index
    %17 = vector.load %arg2[%c24, %c0_13] : memref<88x128xf32, #tpu.memory_space<vmem>>, vector<1x128xf32>
    %18 = vector.broadcast %17 : vector<1x128xf32> to vector<8x128xf32>
    %19 = arith.mulf %7, %18 : vector<8x128xf32>
    %20 = arith.addf %16, %19 : vector<8x128xf32>
    %c36 = arith.constant 36 : index
    %c0_14 = arith.constant 0 : index
    %21 = vector.load %arg2[%c36, %c0_14] : memref<88x128xf32, #tpu.memory_space<vmem>>, vector<1x128xf32>
    %22 = vector.broadcast %21 : vector<1x128xf32> to vector<8x128xf32>
    %23 = arith.mulf %9, %22 : vector<8x128xf32>
    %24 = arith.addf %20, %23 : vector<8x128xf32>
    %c48 = arith.constant 48 : index
    %c0_15 = arith.constant 0 : index
    %25 = vector.load %arg2[%c48, %c0_15] : memref<88x128xf32, #tpu.memory_space<vmem>>, vector<1x128xf32>
    %26 = vector.broadcast %25 : vector<1x128xf32> to vector<8x128xf32>
    %27 = arith.addf %24, %26 : vector<8x128xf32>
    %cst = arith.constant 0.000000e+00 : f32
    %28 = vector.broadcast %cst : f32 to vector<8x128xf32>
    %29 = arith.maximumf %27, %28 : vector<8x128xf32>
    %c60 = arith.constant 60 : index
    %c0_16 = arith.constant 0 : index
    %30 = vector.load %arg2[%c60, %c0_16] : memref<88x128xf32, #tpu.memory_space<vmem>>, vector<1x128xf32>
    %31 = vector.broadcast %30 : vector<1x128xf32> to vector<8x128xf32>
    %32 = arith.mulf %29, %31 : vector<8x128xf32>
    %c61 = arith.constant 61 : index
    %c0_17 = arith.constant 0 : index
    %33 = vector.load %arg2[%c61, %c0_17] : memref<88x128xf32, #tpu.memory_space<vmem>>, vector<1x128xf32>
    %34 = vector.broadcast %33 : vector<1x128xf32> to vector<8x128xf32>
    %35 = arith.mulf %29, %34 : vector<8x128xf32>
    %c1_18 = arith.constant 1 : index
    %c0_19 = arith.constant 0 : index
    %36 = vector.load %arg2[%c1_18, %c0_19] : memref<88x128xf32, #tpu.memory_space<vmem>>, vector<1x128xf32>
    %37 = vector.broadcast %36 : vector<1x128xf32> to vector<8x128xf32>
    %38 = arith.mulf %3, %37 : vector<8x128xf32>
    %c13 = arith.constant 13 : index
    %c0_20 = arith.constant 0 : index
    %39 = vector.load %arg2[%c13, %c0_20] : memref<88x128xf32, #tpu.memory_space<vmem>>, vector<1x128xf32>
    %40 = vector.broadcast %39 : vector<1x128xf32> to vector<8x128xf32>
    %41 = arith.mulf %5, %40 : vector<8x128xf32>
    %42 = arith.addf %38, %41 : vector<8x128xf32>
    %c25 = arith.constant 25 : index
    %c0_21 = arith.constant 0 : index
    %43 = vector.load %arg2[%c25, %c0_21] : memref<88x128xf32, #tpu.memory_space<vmem>>, vector<1x128xf32>
    %44 = vector.broadcast %43 : vector<1x128xf32> to vector<8x128xf32>
    %45 = arith.mulf %7, %44 : vector<8x128xf32>
    %46 = arith.addf %42, %45 : vector<8x128xf32>
    %c37 = arith.constant 37 : index
    %c0_22 = arith.constant 0 : index
    %47 = vector.load %arg2[%c37, %c0_22] : memref<88x128xf32, #tpu.memory_space<vmem>>, vector<1x128xf32>
    %48 = vector.broadcast %47 : vector<1x128xf32> to vector<8x128xf32>
    %49 = arith.mulf %9, %48 : vector<8x128xf32>
    %50 = arith.addf %46, %49 : vector<8x128xf32>
    %c49 = arith.constant 49 : index
    %c0_23 = arith.constant 0 : index
    %51 = vector.load %arg2[%c49, %c0_23] : memref<88x128xf32, #tpu.memory_space<vmem>>, vector<1x128xf32>
    %52 = vector.broadcast %51 : vector<1x128xf32> to vector<8x128xf32>
    %53 = arith.addf %50, %52 : vector<8x128xf32>
    %cst_24 = arith.constant 0.000000e+00 : f32
    %54 = vector.broadcast %cst_24 : f32 to vector<8x128xf32>
    %55 = arith.maximumf %53, %54 : vector<8x128xf32>
    %c62 = arith.constant 62 : index
    %c0_25 = arith.constant 0 : index
    %56 = vector.load %arg2[%c62, %c0_25] : memref<88x128xf32, #tpu.memory_space<vmem>>, vector<1x128xf32>
    %57 = vector.broadcast %56 : vector<1x128xf32> to vector<8x128xf32>
    %58 = arith.mulf %55, %57 : vector<8x128xf32>
    %59 = arith.addf %32, %58 : vector<8x128xf32>
    %c63 = arith.constant 63 : index
    %c0_26 = arith.constant 0 : index
    %60 = vector.load %arg2[%c63, %c0_26] : memref<88x128xf32, #tpu.memory_space<vmem>>, vector<1x128xf32>
    %61 = vector.broadcast %60 : vector<1x128xf32> to vector<8x128xf32>
    %62 = arith.mulf %55, %61 : vector<8x128xf32>
    %63 = arith.addf %35, %62 : vector<8x128xf32>
    %c2_27 = arith.constant 2 : index
    %c0_28 = arith.constant 0 : index
    %64 = vector.load %arg2[%c2_27, %c0_28] : memref<88x128xf32, #tpu.memory_space<vmem>>, vector<1x128xf32>
    %65 = vector.broadcast %64 : vector<1x128xf32> to vector<8x128xf32>
    %66 = arith.mulf %3, %65 : vector<8x128xf32>
    %c14 = arith.constant 14 : index
    %c0_29 = arith.constant 0 : index
    %67 = vector.load %arg2[%c14, %c0_29] : memref<88x128xf32, #tpu.memory_space<vmem>>, vector<1x128xf32>
    %68 = vector.broadcast %67 : vector<1x128xf32> to vector<8x128xf32>
    %69 = arith.mulf %5, %68 : vector<8x128xf32>
    %70 = arith.addf %66, %69 : vector<8x128xf32>
    %c26 = arith.constant 26 : index
    %c0_30 = arith.constant 0 : index
    %71 = vector.load %arg2[%c26, %c0_30] : memref<88x128xf32, #tpu.memory_space<vmem>>, vector<1x128xf32>
    %72 = vector.broadcast %71 : vector<1x128xf32> to vector<8x128xf32>
    %73 = arith.mulf %7, %72 : vector<8x128xf32>
    %74 = arith.addf %70, %73 : vector<8x128xf32>
    %c38 = arith.constant 38 : index
    %c0_31 = arith.constant 0 : index
    %75 = vector.load %arg2[%c38, %c0_31] : memref<88x128xf32, #tpu.memory_space<vmem>>, vector<1x128xf32>
    %76 = vector.broadcast %75 : vector<1x128xf32> to vector<8x128xf32>
    %77 = arith.mulf %9, %76 : vector<8x128xf32>
    %78 = arith.addf %74, %77 : vector<8x128xf32>
    %c50 = arith.constant 50 : index
    %c0_32 = arith.constant 0 : index
    %79 = vector.load %arg2[%c50, %c0_32] : memref<88x128xf32, #tpu.memory_space<vmem>>, vector<1x128xf32>
    %80 = vector.broadcast %79 : vector<1x128xf32> to vector<8x128xf32>
    %81 = arith.addf %78, %80 : vector<8x128xf32>
    %cst_33 = arith.constant 0.000000e+00 : f32
    %82 = vector.broadcast %cst_33 : f32 to vector<8x128xf32>
    %83 = arith.maximumf %81, %82 : vector<8x128xf32>
    %c64 = arith.constant 64 : index
    %c0_34 = arith.constant 0 : index
    %84 = vector.load %arg2[%c64, %c0_34] : memref<88x128xf32, #tpu.memory_space<vmem>>, vector<1x128xf32>
    %85 = vector.broadcast %84 : vector<1x128xf32> to vector<8x128xf32>
    %86 = arith.mulf %83, %85 : vector<8x128xf32>
    %87 = arith.addf %59, %86 : vector<8x128xf32>
    %c65 = arith.constant 65 : index
    %c0_35 = arith.constant 0 : index
    %88 = vector.load %arg2[%c65, %c0_35] : memref<88x128xf32, #tpu.memory_space<vmem>>, vector<1x128xf32>
    %89 = vector.broadcast %88 : vector<1x128xf32> to vector<8x128xf32>
    %90 = arith.mulf %83, %89 : vector<8x128xf32>
    %91 = arith.addf %63, %90 : vector<8x128xf32>
    %c3_36 = arith.constant 3 : index
    %c0_37 = arith.constant 0 : index
    %92 = vector.load %arg2[%c3_36, %c0_37] : memref<88x128xf32, #tpu.memory_space<vmem>>, vector<1x128xf32>
    %93 = vector.broadcast %92 : vector<1x128xf32> to vector<8x128xf32>
    %94 = arith.mulf %3, %93 : vector<8x128xf32>
    %c15 = arith.constant 15 : index
    %c0_38 = arith.constant 0 : index
    %95 = vector.load %arg2[%c15, %c0_38] : memref<88x128xf32, #tpu.memory_space<vmem>>, vector<1x128xf32>
    %96 = vector.broadcast %95 : vector<1x128xf32> to vector<8x128xf32>
    %97 = arith.mulf %5, %96 : vector<8x128xf32>
    %98 = arith.addf %94, %97 : vector<8x128xf32>
    %c27 = arith.constant 27 : index
    %c0_39 = arith.constant 0 : index
    %99 = vector.load %arg2[%c27, %c0_39] : memref<88x128xf32, #tpu.memory_space<vmem>>, vector<1x128xf32>
    %100 = vector.broadcast %99 : vector<1x128xf32> to vector<8x128xf32>
    %101 = arith.mulf %7, %100 : vector<8x128xf32>
    %102 = arith.addf %98, %101 : vector<8x128xf32>
    %c39 = arith.constant 39 : index
    %c0_40 = arith.constant 0 : index
    %103 = vector.load %arg2[%c39, %c0_40] : memref<88x128xf32, #tpu.memory_space<vmem>>, vector<1x128xf32>
    %104 = vector.broadcast %103 : vector<1x128xf32> to vector<8x128xf32>
    %105 = arith.mulf %9, %104 : vector<8x128xf32>
    %106 = arith.addf %102, %105 : vector<8x128xf32>
    %c51 = arith.constant 51 : index
    %c0_41 = arith.constant 0 : index
    %107 = vector.load %arg2[%c51, %c0_41] : memref<88x128xf32, #tpu.memory_space<vmem>>, vector<1x128xf32>
    %108 = vector.broadcast %107 : vector<1x128xf32> to vector<8x128xf32>
    %109 = arith.addf %106, %108 : vector<8x128xf32>
    %cst_42 = arith.constant 0.000000e+00 : f32
    %110 = vector.broadcast %cst_42 : f32 to vector<8x128xf32>
    %111 = arith.maximumf %109, %110 : vector<8x128xf32>
    %c66 = arith.constant 66 : index
    %c0_43 = arith.constant 0 : index
    %112 = vector.load %arg2[%c66, %c0_43] : memref<88x128xf32, #tpu.memory_space<vmem>>, vector<1x128xf32>
    %113 = vector.broadcast %112 : vector<1x128xf32> to vector<8x128xf32>
    %114 = arith.mulf %111, %113 : vector<8x128xf32>
    %115 = arith.addf %87, %114 : vector<8x128xf32>
    %c67 = arith.constant 67 : index
    %c0_44 = arith.constant 0 : index
    %116 = vector.load %arg2[%c67, %c0_44] : memref<88x128xf32, #tpu.memory_space<vmem>>, vector<1x128xf32>
    %117 = vector.broadcast %116 : vector<1x128xf32> to vector<8x128xf32>
    %118 = arith.mulf %111, %117 : vector<8x128xf32>
    %119 = arith.addf %91, %118 : vector<8x128xf32>
    %c4 = arith.constant 4 : index
    %c0_45 = arith.constant 0 : index
    %120 = vector.load %arg2[%c4, %c0_45] : memref<88x128xf32, #tpu.memory_space<vmem>>, vector<1x128xf32>
    %121 = vector.broadcast %120 : vector<1x128xf32> to vector<8x128xf32>
    %122 = arith.mulf %3, %121 : vector<8x128xf32>
    %c16 = arith.constant 16 : index
    %c0_46 = arith.constant 0 : index
    %123 = vector.load %arg2[%c16, %c0_46] : memref<88x128xf32, #tpu.memory_space<vmem>>, vector<1x128xf32>
    %124 = vector.broadcast %123 : vector<1x128xf32> to vector<8x128xf32>
    %125 = arith.mulf %5, %124 : vector<8x128xf32>
    %126 = arith.addf %122, %125 : vector<8x128xf32>
    %c28 = arith.constant 28 : index
    %c0_47 = arith.constant 0 : index
    %127 = vector.load %arg2[%c28, %c0_47] : memref<88x128xf32, #tpu.memory_space<vmem>>, vector<1x128xf32>
    %128 = vector.broadcast %127 : vector<1x128xf32> to vector<8x128xf32>
    %129 = arith.mulf %7, %128 : vector<8x128xf32>
    %130 = arith.addf %126, %129 : vector<8x128xf32>
    %c40 = arith.constant 40 : index
    %c0_48 = arith.constant 0 : index
    %131 = vector.load %arg2[%c40, %c0_48] : memref<88x128xf32, #tpu.memory_space<vmem>>, vector<1x128xf32>
    %132 = vector.broadcast %131 : vector<1x128xf32> to vector<8x128xf32>
    %133 = arith.mulf %9, %132 : vector<8x128xf32>
    %134 = arith.addf %130, %133 : vector<8x128xf32>
    %c52 = arith.constant 52 : index
    %c0_49 = arith.constant 0 : index
    %135 = vector.load %arg2[%c52, %c0_49] : memref<88x128xf32, #tpu.memory_space<vmem>>, vector<1x128xf32>
    %136 = vector.broadcast %135 : vector<1x128xf32> to vector<8x128xf32>
    %137 = arith.addf %134, %136 : vector<8x128xf32>
    %cst_50 = arith.constant 0.000000e+00 : f32
    %138 = vector.broadcast %cst_50 : f32 to vector<8x128xf32>
    %139 = arith.maximumf %137, %138 : vector<8x128xf32>
    %c68 = arith.constant 68 : index
    %c0_51 = arith.constant 0 : index
    %140 = vector.load %arg2[%c68, %c0_51] : memref<88x128xf32, #tpu.memory_space<vmem>>, vector<1x128xf32>
    %141 = vector.broadcast %140 : vector<1x128xf32> to vector<8x128xf32>
    %142 = arith.mulf %139, %141 : vector<8x128xf32>
    %143 = arith.addf %115, %142 : vector<8x128xf32>
    %c69 = arith.constant 69 : index
    %c0_52 = arith.constant 0 : index
    %144 = vector.load %arg2[%c69, %c0_52] : memref<88x128xf32, #tpu.memory_space<vmem>>, vector<1x128xf32>
    %145 = vector.broadcast %144 : vector<1x128xf32> to vector<8x128xf32>
    %146 = arith.mulf %139, %145 : vector<8x128xf32>
    %147 = arith.addf %119, %146 : vector<8x128xf32>
    %c5 = arith.constant 5 : index
    %c0_53 = arith.constant 0 : index
    %148 = vector.load %arg2[%c5, %c0_53] : memref<88x128xf32, #tpu.memory_space<vmem>>, vector<1x128xf32>
    %149 = vector.broadcast %148 : vector<1x128xf32> to vector<8x128xf32>
    %150 = arith.mulf %3, %149 : vector<8x128xf32>
    %c17 = arith.constant 17 : index
    %c0_54 = arith.constant 0 : index
    %151 = vector.load %arg2[%c17, %c0_54] : memref<88x128xf32, #tpu.memory_space<vmem>>, vector<1x128xf32>
    %152 = vector.broadcast %151 : vector<1x128xf32> to vector<8x128xf32>
    %153 = arith.mulf %5, %152 : vector<8x128xf32>
    %154 = arith.addf %150, %153 : vector<8x128xf32>
    %c29 = arith.constant 29 : index
    %c0_55 = arith.constant 0 : index
    %155 = vector.load %arg2[%c29, %c0_55] : memref<88x128xf32, #tpu.memory_space<vmem>>, vector<1x128xf32>
    %156 = vector.broadcast %155 : vector<1x128xf32> to vector<8x128xf32>
    %157 = arith.mulf %7, %156 : vector<8x128xf32>
    %158 = arith.addf %154, %157 : vector<8x128xf32>
    %c41 = arith.constant 41 : index
    %c0_56 = arith.constant 0 : index
    %159 = vector.load %arg2[%c41, %c0_56] : memref<88x128xf32, #tpu.memory_space<vmem>>, vector<1x128xf32>
    %160 = vector.broadcast %159 : vector<1x128xf32> to vector<8x128xf32>
    %161 = arith.mulf %9, %160 : vector<8x128xf32>
    %162 = arith.addf %158, %161 : vector<8x128xf32>
    %c53 = arith.constant 53 : index
    %c0_57 = arith.constant 0 : index
    %163 = vector.load %arg2[%c53, %c0_57] : memref<88x128xf32, #tpu.memory_space<vmem>>, vector<1x128xf32>
    %164 = vector.broadcast %163 : vector<1x128xf32> to vector<8x128xf32>
    %165 = arith.addf %162, %164 : vector<8x128xf32>
    %cst_58 = arith.constant 0.000000e+00 : f32
    %166 = vector.broadcast %cst_58 : f32 to vector<8x128xf32>
    %167 = arith.maximumf %165, %166 : vector<8x128xf32>
    %c70 = arith.constant 70 : index
    %c0_59 = arith.constant 0 : index
    %168 = vector.load %arg2[%c70, %c0_59] : memref<88x128xf32, #tpu.memory_space<vmem>>, vector<1x128xf32>
    %169 = vector.broadcast %168 : vector<1x128xf32> to vector<8x128xf32>
    %170 = arith.mulf %167, %169 : vector<8x128xf32>
    %171 = arith.addf %143, %170 : vector<8x128xf32>
    %c71 = arith.constant 71 : index
    %c0_60 = arith.constant 0 : index
    %172 = vector.load %arg2[%c71, %c0_60] : memref<88x128xf32, #tpu.memory_space<vmem>>, vector<1x128xf32>
    %173 = vector.broadcast %172 : vector<1x128xf32> to vector<8x128xf32>
    %174 = arith.mulf %167, %173 : vector<8x128xf32>
    %175 = arith.addf %147, %174 : vector<8x128xf32>
    %c6 = arith.constant 6 : index
    %c0_61 = arith.constant 0 : index
    %176 = vector.load %arg2[%c6, %c0_61] : memref<88x128xf32, #tpu.memory_space<vmem>>, vector<1x128xf32>
    %177 = vector.broadcast %176 : vector<1x128xf32> to vector<8x128xf32>
    %178 = arith.mulf %3, %177 : vector<8x128xf32>
    %c18 = arith.constant 18 : index
    %c0_62 = arith.constant 0 : index
    %179 = vector.load %arg2[%c18, %c0_62] : memref<88x128xf32, #tpu.memory_space<vmem>>, vector<1x128xf32>
    %180 = vector.broadcast %179 : vector<1x128xf32> to vector<8x128xf32>
    %181 = arith.mulf %5, %180 : vector<8x128xf32>
    %182 = arith.addf %178, %181 : vector<8x128xf32>
    %c30 = arith.constant 30 : index
    %c0_63 = arith.constant 0 : index
    %183 = vector.load %arg2[%c30, %c0_63] : memref<88x128xf32, #tpu.memory_space<vmem>>, vector<1x128xf32>
    %184 = vector.broadcast %183 : vector<1x128xf32> to vector<8x128xf32>
    %185 = arith.mulf %7, %184 : vector<8x128xf32>
    %186 = arith.addf %182, %185 : vector<8x128xf32>
    %c42 = arith.constant 42 : index
    %c0_64 = arith.constant 0 : index
    %187 = vector.load %arg2[%c42, %c0_64] : memref<88x128xf32, #tpu.memory_space<vmem>>, vector<1x128xf32>
    %188 = vector.broadcast %187 : vector<1x128xf32> to vector<8x128xf32>
    %189 = arith.mulf %9, %188 : vector<8x128xf32>
    %190 = arith.addf %186, %189 : vector<8x128xf32>
    %c54 = arith.constant 54 : index
    %c0_65 = arith.constant 0 : index
    %191 = vector.load %arg2[%c54, %c0_65] : memref<88x128xf32, #tpu.memory_space<vmem>>, vector<1x128xf32>
    %192 = vector.broadcast %191 : vector<1x128xf32> to vector<8x128xf32>
    %193 = arith.addf %190, %192 : vector<8x128xf32>
    %cst_66 = arith.constant 0.000000e+00 : f32
    %194 = vector.broadcast %cst_66 : f32 to vector<8x128xf32>
    %195 = arith.maximumf %193, %194 : vector<8x128xf32>
    %c72 = arith.constant 72 : index
    %c0_67 = arith.constant 0 : index
    %196 = vector.load %arg2[%c72, %c0_67] : memref<88x128xf32, #tpu.memory_space<vmem>>, vector<1x128xf32>
    %197 = vector.broadcast %196 : vector<1x128xf32> to vector<8x128xf32>
    %198 = arith.mulf %195, %197 : vector<8x128xf32>
    %199 = arith.addf %171, %198 : vector<8x128xf32>
    %c73 = arith.constant 73 : index
    %c0_68 = arith.constant 0 : index
    %200 = vector.load %arg2[%c73, %c0_68] : memref<88x128xf32, #tpu.memory_space<vmem>>, vector<1x128xf32>
    %201 = vector.broadcast %200 : vector<1x128xf32> to vector<8x128xf32>
    %202 = arith.mulf %195, %201 : vector<8x128xf32>
    %203 = arith.addf %175, %202 : vector<8x128xf32>
    %c7 = arith.constant 7 : index
    %c0_69 = arith.constant 0 : index
    %204 = vector.load %arg2[%c7, %c0_69] : memref<88x128xf32, #tpu.memory_space<vmem>>, vector<1x128xf32>
    %205 = vector.broadcast %204 : vector<1x128xf32> to vector<8x128xf32>
    %206 = arith.mulf %3, %205 : vector<8x128xf32>
    %c19 = arith.constant 19 : index
    %c0_70 = arith.constant 0 : index
    %207 = vector.load %arg2[%c19, %c0_70] : memref<88x128xf32, #tpu.memory_space<vmem>>, vector<1x128xf32>
    %208 = vector.broadcast %207 : vector<1x128xf32> to vector<8x128xf32>
    %209 = arith.mulf %5, %208 : vector<8x128xf32>
    %210 = arith.addf %206, %209 : vector<8x128xf32>
    %c31 = arith.constant 31 : index
    %c0_71 = arith.constant 0 : index
    %211 = vector.load %arg2[%c31, %c0_71] : memref<88x128xf32, #tpu.memory_space<vmem>>, vector<1x128xf32>
    %212 = vector.broadcast %211 : vector<1x128xf32> to vector<8x128xf32>
    %213 = arith.mulf %7, %212 : vector<8x128xf32>
    %214 = arith.addf %210, %213 : vector<8x128xf32>
    %c43 = arith.constant 43 : index
    %c0_72 = arith.constant 0 : index
    %215 = vector.load %arg2[%c43, %c0_72] : memref<88x128xf32, #tpu.memory_space<vmem>>, vector<1x128xf32>
    %216 = vector.broadcast %215 : vector<1x128xf32> to vector<8x128xf32>
    %217 = arith.mulf %9, %216 : vector<8x128xf32>
    %218 = arith.addf %214, %217 : vector<8x128xf32>
    %c55 = arith.constant 55 : index
    %c0_73 = arith.constant 0 : index
    %219 = vector.load %arg2[%c55, %c0_73] : memref<88x128xf32, #tpu.memory_space<vmem>>, vector<1x128xf32>
    %220 = vector.broadcast %219 : vector<1x128xf32> to vector<8x128xf32>
    %221 = arith.addf %218, %220 : vector<8x128xf32>
    %cst_74 = arith.constant 0.000000e+00 : f32
    %222 = vector.broadcast %cst_74 : f32 to vector<8x128xf32>
    %223 = arith.maximumf %221, %222 : vector<8x128xf32>
    %c74 = arith.constant 74 : index
    %c0_75 = arith.constant 0 : index
    %224 = vector.load %arg2[%c74, %c0_75] : memref<88x128xf32, #tpu.memory_space<vmem>>, vector<1x128xf32>
    %225 = vector.broadcast %224 : vector<1x128xf32> to vector<8x128xf32>
    %226 = arith.mulf %223, %225 : vector<8x128xf32>
    %227 = arith.addf %199, %226 : vector<8x128xf32>
    %c75 = arith.constant 75 : index
    %c0_76 = arith.constant 0 : index
    %228 = vector.load %arg2[%c75, %c0_76] : memref<88x128xf32, #tpu.memory_space<vmem>>, vector<1x128xf32>
    %229 = vector.broadcast %228 : vector<1x128xf32> to vector<8x128xf32>
    %230 = arith.mulf %223, %229 : vector<8x128xf32>
    %231 = arith.addf %203, %230 : vector<8x128xf32>
    %c8 = arith.constant 8 : index
    %c0_77 = arith.constant 0 : index
    %232 = vector.load %arg2[%c8, %c0_77] : memref<88x128xf32, #tpu.memory_space<vmem>>, vector<1x128xf32>
    %233 = vector.broadcast %232 : vector<1x128xf32> to vector<8x128xf32>
    %234 = arith.mulf %3, %233 : vector<8x128xf32>
    %c20 = arith.constant 20 : index
    %c0_78 = arith.constant 0 : index
    %235 = vector.load %arg2[%c20, %c0_78] : memref<88x128xf32, #tpu.memory_space<vmem>>, vector<1x128xf32>
    %236 = vector.broadcast %235 : vector<1x128xf32> to vector<8x128xf32>
    %237 = arith.mulf %5, %236 : vector<8x128xf32>
    %238 = arith.addf %234, %237 : vector<8x128xf32>
    %c32 = arith.constant 32 : index
    %c0_79 = arith.constant 0 : index
    %239 = vector.load %arg2[%c32, %c0_79] : memref<88x128xf32, #tpu.memory_space<vmem>>, vector<1x128xf32>
    %240 = vector.broadcast %239 : vector<1x128xf32> to vector<8x128xf32>
    %241 = arith.mulf %7, %240 : vector<8x128xf32>
    %242 = arith.addf %238, %241 : vector<8x128xf32>
    %c44 = arith.constant 44 : index
    %c0_80 = arith.constant 0 : index
    %243 = vector.load %arg2[%c44, %c0_80] : memref<88x128xf32, #tpu.memory_space<vmem>>, vector<1x128xf32>
    %244 = vector.broadcast %243 : vector<1x128xf32> to vector<8x128xf32>
    %245 = arith.mulf %9, %244 : vector<8x128xf32>
    %246 = arith.addf %242, %245 : vector<8x128xf32>
    %c56 = arith.constant 56 : index
    %c0_81 = arith.constant 0 : index
    %247 = vector.load %arg2[%c56, %c0_81] : memref<88x128xf32, #tpu.memory_space<vmem>>, vector<1x128xf32>
    %248 = vector.broadcast %247 : vector<1x128xf32> to vector<8x128xf32>
    %249 = arith.addf %246, %248 : vector<8x128xf32>
    %cst_82 = arith.constant 0.000000e+00 : f32
    %250 = vector.broadcast %cst_82 : f32 to vector<8x128xf32>
    %251 = arith.maximumf %249, %250 : vector<8x128xf32>
    %c76 = arith.constant 76 : index
    %c0_83 = arith.constant 0 : index
    %252 = vector.load %arg2[%c76, %c0_83] : memref<88x128xf32, #tpu.memory_space<vmem>>, vector<1x128xf32>
    %253 = vector.broadcast %252 : vector<1x128xf32> to vector<8x128xf32>
    %254 = arith.mulf %251, %253 : vector<8x128xf32>
    %255 = arith.addf %227, %254 : vector<8x128xf32>
    %c77 = arith.constant 77 : index
    %c0_84 = arith.constant 0 : index
    %256 = vector.load %arg2[%c77, %c0_84] : memref<88x128xf32, #tpu.memory_space<vmem>>, vector<1x128xf32>
    %257 = vector.broadcast %256 : vector<1x128xf32> to vector<8x128xf32>
    %258 = arith.mulf %251, %257 : vector<8x128xf32>
    %259 = arith.addf %231, %258 : vector<8x128xf32>
    %c9 = arith.constant 9 : index
    %c0_85 = arith.constant 0 : index
    %260 = vector.load %arg2[%c9, %c0_85] : memref<88x128xf32, #tpu.memory_space<vmem>>, vector<1x128xf32>
    %261 = vector.broadcast %260 : vector<1x128xf32> to vector<8x128xf32>
    %262 = arith.mulf %3, %261 : vector<8x128xf32>
    %c21 = arith.constant 21 : index
    %c0_86 = arith.constant 0 : index
    %263 = vector.load %arg2[%c21, %c0_86] : memref<88x128xf32, #tpu.memory_space<vmem>>, vector<1x128xf32>
    %264 = vector.broadcast %263 : vector<1x128xf32> to vector<8x128xf32>
    %265 = arith.mulf %5, %264 : vector<8x128xf32>
    %266 = arith.addf %262, %265 : vector<8x128xf32>
    %c33 = arith.constant 33 : index
    %c0_87 = arith.constant 0 : index
    %267 = vector.load %arg2[%c33, %c0_87] : memref<88x128xf32, #tpu.memory_space<vmem>>, vector<1x128xf32>
    %268 = vector.broadcast %267 : vector<1x128xf32> to vector<8x128xf32>
    %269 = arith.mulf %7, %268 : vector<8x128xf32>
    %270 = arith.addf %266, %269 : vector<8x128xf32>
    %c45 = arith.constant 45 : index
    %c0_88 = arith.constant 0 : index
    %271 = vector.load %arg2[%c45, %c0_88] : memref<88x128xf32, #tpu.memory_space<vmem>>, vector<1x128xf32>
    %272 = vector.broadcast %271 : vector<1x128xf32> to vector<8x128xf32>
    %273 = arith.mulf %9, %272 : vector<8x128xf32>
    %274 = arith.addf %270, %273 : vector<8x128xf32>
    %c57 = arith.constant 57 : index
    %c0_89 = arith.constant 0 : index
    %275 = vector.load %arg2[%c57, %c0_89] : memref<88x128xf32, #tpu.memory_space<vmem>>, vector<1x128xf32>
    %276 = vector.broadcast %275 : vector<1x128xf32> to vector<8x128xf32>
    %277 = arith.addf %274, %276 : vector<8x128xf32>
    %cst_90 = arith.constant 0.000000e+00 : f32
    %278 = vector.broadcast %cst_90 : f32 to vector<8x128xf32>
    %279 = arith.maximumf %277, %278 : vector<8x128xf32>
    %c78 = arith.constant 78 : index
    %c0_91 = arith.constant 0 : index
    %280 = vector.load %arg2[%c78, %c0_91] : memref<88x128xf32, #tpu.memory_space<vmem>>, vector<1x128xf32>
    %281 = vector.broadcast %280 : vector<1x128xf32> to vector<8x128xf32>
    %282 = arith.mulf %279, %281 : vector<8x128xf32>
    %283 = arith.addf %255, %282 : vector<8x128xf32>
    %c79 = arith.constant 79 : index
    %c0_92 = arith.constant 0 : index
    %284 = vector.load %arg2[%c79, %c0_92] : memref<88x128xf32, #tpu.memory_space<vmem>>, vector<1x128xf32>
    %285 = vector.broadcast %284 : vector<1x128xf32> to vector<8x128xf32>
    %286 = arith.mulf %279, %285 : vector<8x128xf32>
    %287 = arith.addf %259, %286 : vector<8x128xf32>
    %c10 = arith.constant 10 : index
    %c0_93 = arith.constant 0 : index
    %288 = vector.load %arg2[%c10, %c0_93] : memref<88x128xf32, #tpu.memory_space<vmem>>, vector<1x128xf32>
    %289 = vector.broadcast %288 : vector<1x128xf32> to vector<8x128xf32>
    %290 = arith.mulf %3, %289 : vector<8x128xf32>
    %c22 = arith.constant 22 : index
    %c0_94 = arith.constant 0 : index
    %291 = vector.load %arg2[%c22, %c0_94] : memref<88x128xf32, #tpu.memory_space<vmem>>, vector<1x128xf32>
    %292 = vector.broadcast %291 : vector<1x128xf32> to vector<8x128xf32>
    %293 = arith.mulf %5, %292 : vector<8x128xf32>
    %294 = arith.addf %290, %293 : vector<8x128xf32>
    %c34 = arith.constant 34 : index
    %c0_95 = arith.constant 0 : index
    %295 = vector.load %arg2[%c34, %c0_95] : memref<88x128xf32, #tpu.memory_space<vmem>>, vector<1x128xf32>
    %296 = vector.broadcast %295 : vector<1x128xf32> to vector<8x128xf32>
    %297 = arith.mulf %7, %296 : vector<8x128xf32>
    %298 = arith.addf %294, %297 : vector<8x128xf32>
    %c46 = arith.constant 46 : index
    %c0_96 = arith.constant 0 : index
    %299 = vector.load %arg2[%c46, %c0_96] : memref<88x128xf32, #tpu.memory_space<vmem>>, vector<1x128xf32>
    %300 = vector.broadcast %299 : vector<1x128xf32> to vector<8x128xf32>
    %301 = arith.mulf %9, %300 : vector<8x128xf32>
    %302 = arith.addf %298, %301 : vector<8x128xf32>
    %c58 = arith.constant 58 : index
    %c0_97 = arith.constant 0 : index
    %303 = vector.load %arg2[%c58, %c0_97] : memref<88x128xf32, #tpu.memory_space<vmem>>, vector<1x128xf32>
    %304 = vector.broadcast %303 : vector<1x128xf32> to vector<8x128xf32>
    %305 = arith.addf %302, %304 : vector<8x128xf32>
    %cst_98 = arith.constant 0.000000e+00 : f32
    %306 = vector.broadcast %cst_98 : f32 to vector<8x128xf32>
    %307 = arith.maximumf %305, %306 : vector<8x128xf32>
    %c80 = arith.constant 80 : index
    %c0_99 = arith.constant 0 : index
    %308 = vector.load %arg2[%c80, %c0_99] : memref<88x128xf32, #tpu.memory_space<vmem>>, vector<1x128xf32>
    %309 = vector.broadcast %308 : vector<1x128xf32> to vector<8x128xf32>
    %310 = arith.mulf %307, %309 : vector<8x128xf32>
    %311 = arith.addf %283, %310 : vector<8x128xf32>
    %c81 = arith.constant 81 : index
    %c0_100 = arith.constant 0 : index
    %312 = vector.load %arg2[%c81, %c0_100] : memref<88x128xf32, #tpu.memory_space<vmem>>, vector<1x128xf32>
    %313 = vector.broadcast %312 : vector<1x128xf32> to vector<8x128xf32>
    %314 = arith.mulf %307, %313 : vector<8x128xf32>
    %315 = arith.addf %287, %314 : vector<8x128xf32>
    %c11 = arith.constant 11 : index
    %c0_101 = arith.constant 0 : index
    %316 = vector.load %arg2[%c11, %c0_101] : memref<88x128xf32, #tpu.memory_space<vmem>>, vector<1x128xf32>
    %317 = vector.broadcast %316 : vector<1x128xf32> to vector<8x128xf32>
    %318 = arith.mulf %3, %317 : vector<8x128xf32>
    %c23 = arith.constant 23 : index
    %c0_102 = arith.constant 0 : index
    %319 = vector.load %arg2[%c23, %c0_102] : memref<88x128xf32, #tpu.memory_space<vmem>>, vector<1x128xf32>
    %320 = vector.broadcast %319 : vector<1x128xf32> to vector<8x128xf32>
    %321 = arith.mulf %5, %320 : vector<8x128xf32>
    %322 = arith.addf %318, %321 : vector<8x128xf32>
    %c35 = arith.constant 35 : index
    %c0_103 = arith.constant 0 : index
    %323 = vector.load %arg2[%c35, %c0_103] : memref<88x128xf32, #tpu.memory_space<vmem>>, vector<1x128xf32>
    %324 = vector.broadcast %323 : vector<1x128xf32> to vector<8x128xf32>
    %325 = arith.mulf %7, %324 : vector<8x128xf32>
    %326 = arith.addf %322, %325 : vector<8x128xf32>
    %c47 = arith.constant 47 : index
    %c0_104 = arith.constant 0 : index
    %327 = vector.load %arg2[%c47, %c0_104] : memref<88x128xf32, #tpu.memory_space<vmem>>, vector<1x128xf32>
    %328 = vector.broadcast %327 : vector<1x128xf32> to vector<8x128xf32>
    %329 = arith.mulf %9, %328 : vector<8x128xf32>
    %330 = arith.addf %326, %329 : vector<8x128xf32>
    %c59 = arith.constant 59 : index
    %c0_105 = arith.constant 0 : index
    %331 = vector.load %arg2[%c59, %c0_105] : memref<88x128xf32, #tpu.memory_space<vmem>>, vector<1x128xf32>
    %332 = vector.broadcast %331 : vector<1x128xf32> to vector<8x128xf32>
    %333 = arith.addf %330, %332 : vector<8x128xf32>
    %cst_106 = arith.constant 0.000000e+00 : f32
    %334 = vector.broadcast %cst_106 : f32 to vector<8x128xf32>
    %335 = arith.maximumf %333, %334 : vector<8x128xf32>
    %c82 = arith.constant 82 : index
    %c0_107 = arith.constant 0 : index
    %336 = vector.load %arg2[%c82, %c0_107] : memref<88x128xf32, #tpu.memory_space<vmem>>, vector<1x128xf32>
    %337 = vector.broadcast %336 : vector<1x128xf32> to vector<8x128xf32>
    %338 = arith.mulf %335, %337 : vector<8x128xf32>
    %339 = arith.addf %311, %338 : vector<8x128xf32>
    %c83 = arith.constant 83 : index
    %c0_108 = arith.constant 0 : index
    %340 = vector.load %arg2[%c83, %c0_108] : memref<88x128xf32, #tpu.memory_space<vmem>>, vector<1x128xf32>
    %341 = vector.broadcast %340 : vector<1x128xf32> to vector<8x128xf32>
    %342 = arith.mulf %335, %341 : vector<8x128xf32>
    %343 = arith.addf %315, %342 : vector<8x128xf32>
    %344 = vector.broadcast %0 : f32 to vector<8x128xf32>
    %345 = arith.addf %339, %344 : vector<8x128xf32>
    %c0_109 = arith.constant 0 : index
    %c0_110 = arith.constant 0 : index
    %c0_111 = arith.constant 0 : index
    %346 = vector.load %arg4[%c0_109, %c0_110, %c0_111] : memref<2x8x128xf32, #tpu.memory_space<vmem>>, vector<1x8x128xf32>
    %347 = vector.shape_cast %346 : vector<1x8x128xf32> to vector<8x128xf32>
    %348 = vector.shape_cast %345 : vector<8x128xf32> to vector<1x8x128xf32>
    tpu.vector_store %arg4[%c0_109, %c0_110, %c0_111], %348 {strides = array<i32>} : memref<2x8x128xf32, #tpu.memory_space<vmem>>, vector<1x8x128xf32>,
    %349 = vector.broadcast %1 : f32 to vector<8x128xf32>
    %350 = arith.addf %343, %349 : vector<8x128xf32>
    %c1_112 = arith.constant 1 : index
    %c0_113 = arith.constant 0 : index
    %c0_114 = arith.constant 0 : index
    %351 = vector.load %arg4[%c1_112, %c0_113, %c0_114] : memref<2x8x128xf32, #tpu.memory_space<vmem>>, vector<1x8x128xf32>
    %352 = vector.shape_cast %351 : vector<1x8x128xf32> to vector<8x128xf32>
    %353 = vector.shape_cast %350 : vector<8x128xf32> to vector<1x8x128xf32>
    tpu.vector_store %arg4[%c1_112, %c0_113, %c0_114], %353 {strides = array<i32>} : memref<2x8x128xf32, #tpu.memory_space<vmem>>, vector<1x8x128xf32>,
    return
  }
  func.func @transform_0(%arg0: i32) -> (i32, i32, i32) {
    %c0_i32 = arith.constant 0 : i32
    %c0_i32_0 = arith.constant 0 : i32
    %c0_i32_1 = arith.constant 0 : i32
    return %c0_i32, %arg0, %c0_i32_0 : i32, i32, i32
  }
  func.func @transform_1(%arg0: i32) -> (i32, i32) {
    %c0_i32 = arith.constant 0 : i32
    %c0_i32_0 = arith.constant 0 : i32
    %c0_i32_1 = arith.constant 0 : i32
    return %c0_i32, %c0_i32_0 : i32, i32
  }
  func.func @transform_2(%arg0: i32) -> i32 {
    %c0_i32 = arith.constant 0 : i32
    %c0_i32_0 = arith.constant 0 : i32
    return %c0_i32 : i32
  }
  func.func @transform_3(%arg0: i32) -> (i32, i32, i32) {
    %c0_i32 = arith.constant 0 : i32
    %c0_i32_0 = arith.constant 0 : i32
    %c0_i32_1 = arith.constant 0 : i32
    return %c0_i32, %arg0, %c0_i32_0 : i32, i32, i32
  }
}

</mosaic_0001>

<bundles_post_ra>
// kernel: tpu_custom_call.1
= control target key start
LH: loop header
LB: loop body
LE: loop exit
PB: predicated region body
PF: predicated region fallthrough
CT: control target
= control target key end

     0   :  { %8 = vsyncpa [#allocation3], 0  ;;  %s972_s0 = inlined_call_operand.hbm [shape: f32[4,8,128], index: 0, kind: input, shape index: {}]   ;;  %s973_s1 = inlined_call_operand.hbm [shape: f32[88,128], index: 1, kind: input, shape index: {}]   ;;  %s974_s2 = inlined_call_operand.vmem [shape: f32[2], index: 2, kind: input, shape index: {}]   ;;  %s975_s3 = inlined_call_operand.hbm [shape: f32[2,8,128], index: 3, kind: output, shape index: {}]  }
   0x1   :  { %9 = vsyncpa [#allocation7], 0 }
   0x2   :  { %10 = vsyncpa [#allocation5], 0 }
   0x3   :  { %11 = vsyncpa [#allocation4], 0  ;;  %s842_s12 = smov [#allocation2]   ;;  %s756_s16 = scalar_lea.hbm %s972_s0, 512 }
   0x4   :  { %s17_s13 = sshll.u32 %s842_s12, 4  ;;  %p757_p0 = scmp.ne.s32.totalorder %s972_s0, %s756_s16  ;;  %s18_s13 = int_to_ptr.vmem [resolvable:$true] %s17_s13 }
   0x5   :  { %p760_p1 = scmp.lt.u32.totalorder %s756_s16, %s972_s0 }
   0x7   :  { %p762_p2 = pnand %p760_p1, %p757_p0 }
   0x9   :  { %765 = shalt.err (!%p762_p2)
}
   0xa   :  { %s766_s21 = scalar_lea.vmem %s18_s13, 512  ;;  %p771_p4 = scmp.lt.s32.totalorder %s18_s13, %s18_s13 }
   0xb   :  { %p767_p3 = scmp.ne.s32.totalorder %s18_s13, %s766_s21  ;;  %p772_p5 = scmp.lt.s32.totalorder %s766_s21, %s766_s21 }
   0xd   :  { %p773_p6 = por %p772_p5, %p771_p4 }
   0xf   :  { %p774_p7 = pnand %p773_p6, %p767_p3 }
  0x11   :  { %777 = shalt.err (!%p774_p7)
}
  0x12   :  { %s843_s22 = smov 128   ;;  %s844_s23 = smov 8  }
  0x13   :  { %23 = dma.hbm_to_vmem [thread:$0]  %s972_s0, 512, %s18_s13, [#allocation3], %s843_s22, %s843_s22, %s844_s23  }
  0x14   :  { %s845_s26 = smov [#allocation6]   ;;  %s42_s30 = sshll.u32 %s974_s2, 4  ;;  %s43_s30 = int_to_ptr.vmem [resolvable:$true] %s42_s30 }
  0x15   :  { %s29_s27 = sshll.u32 %s845_s26, 4  ;;  %s778_s6 = scalar_lea.hbm %s973_s1, 1408  ;;  %s30_s27 = int_to_ptr.vmem [resolvable:$true] %s29_s27 }
  0x16   :  { %p779_p8 = scmp.ne.s32.totalorder %s973_s1, %s778_s6  ;;  %p782_p9 = scmp.lt.u32.totalorder %s778_s6, %s973_s1 }
  0x18   :  { %p784_p10 = pnand %p782_p9, %p779_p8 }
  0x1a   :  { %787 = shalt.err (!%p784_p10)
}
  0x1b   :  { %s788_s0 = scalar_lea.vmem %s30_s27, 1408  ;;  %p793_p12 = scmp.lt.s32.totalorder %s30_s27, %s30_s27 }
  0x1c   :  { %p789_p11 = scmp.ne.s32.totalorder %s30_s27, %s788_s0  ;;  %p794_p13 = scmp.lt.s32.totalorder %s788_s0, %s788_s0 }
  0x1e   :  { %p795_p0 = por %p794_p13, %p793_p12 }
  0x20   :  { %p796_p1 = pnand %p795_p0, %p789_p11 }
  0x22   :  { %799 = shalt.err (!%p796_p1)
}
  0x23   :  { %35 = dma.hbm_to_vmem [thread:$0]  %s973_s1, 1408, %s30_s27, [#allocation7], %s843_s22, %s843_s22, %s844_s23  }
  0x24   :  { %s800_s12 = scalar_lea.vmem %s43_s30, 16  ;;  %p805_p3 = scmp.lt.s32.totalorder %s43_s30, %s43_s30 }
  0x25   :  { %p801_p2 = scmp.ne.s32.totalorder %s43_s30, %s800_s12  ;;  %p806_p4 = scmp.lt.s32.totalorder %s800_s12, %s800_s12 }
  0x27   :  { %p807_p5 = por %p806_p4, %p805_p3 }
  0x29   :  { %p808_p6 = pnand %p807_p5, %p801_p2 }
  0x2b   :  { %811 = shalt.err (!%p808_p6)
}
  0x2c   :  { %s846_s13 = smov [#allocation8]  }
  0x2d   :  { %45 = dma.vmem_to_smem %s43_s30, 16, %s846_s13, [#allocation5]  }
  0x2e   :  { %834 = dma.done.wait [#allocation3], 512  }
  0x2f   :  { %835 = vsyncadd [#allocation3], 4294966784 }
  0x30   :  { %836 = dma.done.wait [#allocation7], 1408  }
  0x31   :  { %837 = vsyncadd [#allocation7], 4294965888 }
  0x32   :  { %838 = dma.done.wait [#allocation5], 16  }
  0x33   :  { %839 = vsyncadd [#allocation5], 4294967280 }
  0x34   :  { %55 = sfence }
  0x35   :  { %v901_v0 = vld [vmem:[#allocation2] sm:$0xff]  ;;  %v903_v1 = vld [vmem:[#allocation2 + $0x8] sm:$0xff]  ;;  %v905_v2 = vld [vmem:[#allocation2 + $0x10] sm:$0xff]  ;;  %s56_s1 = sld [smem:[#allocation8]]  ;;  %s665_s14 = sld [smem:[#allocation8 + $0x1]] }
  0x36   :  { %v907_v3 = vld [vmem:[#allocation2 + $0x18] sm:$0xff]  ;;  %v666_v4 = vld [vmem:[#allocation6] ss:$0 sm:$0xff]  ;;  %v667_v6 = vld [vmem:[#allocation6 + $0xc] ss:$0 sm:$0xff]  ;;  %s847_s15 = smov [#allocation9]  }
  0x37   :  { %v70_v5 = vmul.f32 %v666_v4, %v901_v0  ;;  %v668_v7 = vld [vmem:[#allocation6 + $0x18] ss:$0 sm:$0xff]  ;;  %v669_v8 = vld [vmem:[#allocation6 + $0x24] ss:$0 sm:$0xff]  ;;  %v76_v9 = vmul.f32 %v667_v6, %v903_v1  ;;  %v673_v12 = vld [vmem:[#allocation6 + $0x1] ss:$0 sm:$0xff] }
  0x38   :  { %v83_v10 = vmul.f32 %v668_v7, %v905_v2  ;;  %v90_v11 = vmul.f32 %v669_v8, %v907_v3  ;;  %v674_v13 = vld [vmem:[#allocation6 + $0xd] ss:$0 sm:$0xff]  ;;  %v675_v14 = vld [vmem:[#allocation6 + $0x19] ss:$0 sm:$0xff]  ;;  %v116_v16 = vmul.f32 %v673_v12, %v901_v0  ;;  %v676_v19 = vld [vmem:[#allocation6 + $0x25] ss:$0 sm:$0xff] }
  0x39   :  { %v77_v15 = vadd.f32 %v76_v9, %v70_v5  ;;  %v122_v17 = vmul.f32 %v674_v13, %v903_v1  ;;  %v129_v18 = vmul.f32 %v675_v14, %v905_v2  ;;  %v136_v20 = vmul.f32 %v676_v19, %v907_v3  ;;  %v680_v21 = vld [vmem:[#allocation6 + $0x2] ss:$0 sm:$0xff]  ;;  %v681_v22 = vld [vmem:[#allocation6 + $0xe] ss:$0 sm:$0xff]  ;;  %v682_v27 = vld [vmem:[#allocation6 + $0x1a] ss:$0 sm:$0xff] }
  0x3a   :  { %v164_v25 = vmul.f32 %v680_v21, %v901_v0  ;;  %v170_v26 = vmul.f32 %v681_v22, %v903_v1  ;;  %v683_v28 = vld [vmem:[#allocation6 + $0x26] ss:$0 sm:$0xff]  ;;  %v670_v29 = vld [vmem:[#allocation6 + $0x30] ss:$0 sm:$0xff]  ;;  %v177_v30 = vmul.f32 %v682_v27, %v905_v2  ;;  %v687_v32 = vld [vmem:[#allocation6 + $0x3] ss:$0 sm:$0xff] }
  0x3b   :  { %v84_v23 = vadd.f32 %v83_v10, %v77_v15  ;;  %v123_v24 = vadd.f32 %v122_v17, %v116_v16  ;;  %v184_v31 = vmul.f32 %v683_v28, %v907_v3  ;;  %v212_v36 = vmul.f32 %v687_v32, %v901_v0  ;;  %v688_v37 = vld [vmem:[#allocation6 + $0xf] ss:$0 sm:$0xff]  ;;  %v689_v38 = vld [vmem:[#allocation6 + $0x1b] ss:$0 sm:$0xff]  ;;  %v690_v39 = vld [vmem:[#allocation6 + $0x27] ss:$0 sm:$0xff] }
  0x3c   :  { %v171_v35 = vadd.f32 %v170_v26, %v164_v25  ;;  %v671_v40 = vld [vmem:[#allocation6 + $0x3c] ss:$0 sm:$0xff]  ;;  %v672_v41 = vld [vmem:[#allocation6 + $0x3d] ss:$0 sm:$0xff]  ;;  %v677_v42 = vld [vmem:[#allocation6 + $0x31] ss:$0 sm:$0xff]  ;;  %v218_v43 = vmul.f32 %v688_v37, %v903_v1  ;;  %v225_v44 = vmul.f32 %v689_v38, %v905_v2  ;;  %v232_v48 = vmul.f32 %v690_v39, %v907_v3 }
  0x3d   :  { %v91_v33 = vadd.f32 %v90_v11, %v84_v23  ;;  %v130_v34 = vadd.f32 %v129_v18, %v123_v24  ;;  %v694_v49 = vld [vmem:[#allocation6 + $0x4] ss:$0 sm:$0xff]  ;;  %v695_v50 = vld [vmem:[#allocation6 + $0x10] ss:$0 sm:$0xff]  ;;  %v696_v51 = vld [vmem:[#allocation6 + $0x1c] ss:$0 sm:$0xff] }
  0x3e   :  { %v178_v47 = vadd.f32 %v177_v30, %v171_v35  ;;  %v678_v52 = vld [vmem:[#allocation6 + $0x3e] ss:$0 sm:$0xff]  ;;  %v684_v53 = vld [vmem:[#allocation6 + $0x32] ss:$0 sm:$0xff]  ;;  %v219_v54 = vadd.f32 %v218_v43, %v212_v36  ;;  %v260_v55 = vmul.f32 %v694_v49, %v901_v0  ;;  %v266_v56 = vmul.f32 %v695_v50, %v903_v1  ;;  %v697_v58 = vld [vmem:[#allocation6 + $0x28] ss:$0 sm:$0xff] }
  0x3f   :  { %v97_v45 = vadd.f32 %v670_v29, %v91_v33  ;;  %v137_v46 = vadd.f32 %v136_v20, %v130_v34  ;;  %v273_v57 = vmul.f32 %v696_v51, %v905_v2  ;;  %v679_v61 = vld [vmem:[#allocation6 + $0x3f] ss:$0 sm:$0xff]  ;;  %v701_v63 = vld [vmem:[#allocation6 + $0x5] ss:$0 sm:$0xff]  ;;  %v280_v6 = vmul.f32 %v697_v58, %v907_v3  ;;  %v702_v8 = vld [vmem:[#allocation6 + $0x11] ss:$0 sm:$0xff] }
  0x40   :  { %v185_v62 = vadd.f32 %v184_v31, %v178_v47  ;;  %v226_v4 = vadd.f32 %v225_v44, %v219_v54  ;;  %v267_v5 = vadd.f32 %v266_v56, %v260_v55  ;;  %v308_v7 = vmul.f32 %v701_v63, %v901_v0  ;;  %v703_v9 = vld [vmem:[#allocation6 + $0x1d] ss:$0 sm:$0xff]  ;;  %v704_v10 = vld [vmem:[#allocation6 + $0x29] ss:$0 sm:$0xff]  ;;  %v691_v15 = vld [vmem:[#allocation6 + $0x33] ss:$0 sm:$0xff] }
  0x41   :  { %v98_v59 = vmax.f32 %v97_v45, 0.0  ;;  %v143_v60 = vadd.f32 %v677_v42, %v137_v46  ;;  %v685_v16 = vld [vmem:[#allocation6 + $0x40] ss:$0 sm:$0xff]  ;;  %v686_v17 = vld [vmem:[#allocation6 + $0x41] ss:$0 sm:$0xff]  ;;  %v314_v20 = vmul.f32 %v702_v8, %v903_v1  ;;  %v321_v21 = vmul.f32 %v703_v9, %v905_v2  ;;  %s651_s16 = sshll.u32 %s847_s15, 4  ;;  %s652_s16 = int_to_ptr.vmem [resolvable:$true] %s651_s16 }
  0x42   :  { %v191_v14 = vadd.f32 %v684_v53, %v185_v62  ;;  %v233_v18 = vadd.f32 %v232_v48, %v226_v4  ;;  %v274_v19 = vadd.f32 %v273_v57, %v267_v5  ;;  %v708_v22 = vld [vmem:[#allocation6 + $0x6] ss:$0 sm:$0xff]  ;;  %v698_v26 = vld [vmem:[#allocation6 + $0x34] ss:$0 sm:$0xff]  ;;  %v328_v27 = vmul.f32 %v704_v10, %v907_v3  ;;  %v709_v28 = vld [vmem:[#allocation6 + $0x12] ss:$0 sm:$0xff]  ;;  %p817_p8 = scmp.lt.s32.totalorder %s652_s16, %s652_s16 }
  0x43   :  { %v104_v11 = vmul.f32 %v671_v40, %v98_v59  ;;  %v110_v12 = vmul.f32 %v672_v41, %v98_v59  ;;  %v144_v13 = vmax.f32 %v143_v60, 0.0  ;;  %v315_v31 = vadd.f32 %v314_v20, %v308_v7  ;;  %v710_v33 = vld [vmem:[#allocation6 + $0x1e] ss:$0 sm:$0xff]  ;;  %v711_v34 = vld [vmem:[#allocation6 + $0x2a] ss:$0 sm:$0xff]  ;;  %s812_s17 = scalar_lea.vmem %s652_s16, 256 }
  0x44   :  { %v192_v25 = vmax.f32 %v191_v14, 0.0  ;;  %v239_v29 = vadd.f32 %v691_v15, %v233_v18  ;;  %v281_v30 = vadd.f32 %v280_v6, %v274_v19  ;;  %v356_v32 = vmul.f32 %v708_v22, %v901_v0  ;;  %v692_v39 = vld [vmem:[#allocation6 + $0x42] ss:$0 sm:$0xff]  ;;  %v693_v40 = vld [vmem:[#allocation6 + $0x43] ss:$0 sm:$0xff]  ;;  %p813_p7 = scmp.ne.s32.totalorder %s652_s16, %s812_s17  ;;  %p818_p9 = scmp.lt.s32.totalorder %s812_s17, %s812_s17 }
  0x45   :  { %v150_v23 = vmul.f32 %v678_v52, %v144_v13  ;;  %v157_v24 = vmul.f32 %v679_v61, %v144_v13  ;;  %v715_v41 = vld [vmem:[#allocation6 + $0x7] ss:$0 sm:$0xff]  ;;  %v322_v44 = vadd.f32 %v321_v21, %v315_v31  ;;  %v362_v45 = vmul.f32 %v709_v28, %v903_v1  ;;  %v716_v46 = vld [vmem:[#allocation6 + $0x13] ss:$0 sm:$0xff]  ;;  %v717_v47 = vld [vmem:[#allocation6 + $0x1f] ss:$0 sm:$0xff] }
  0x46   :  { %v198_v37 = vmul.f32 %v685_v16, %v192_v25  ;;  %v205_v38 = vmul.f32 %v686_v17, %v192_v25  ;;  %v240_v42 = vmax.f32 %v239_v29, 0.0  ;;  %v287_v43 = vadd.f32 %v698_v26, %v281_v30  ;;  %v699_v50 = vld [vmem:[#allocation6 + $0x44] ss:$0 sm:$0xff]  ;;  %v700_v51 = vld [vmem:[#allocation6 + $0x45] ss:$0 sm:$0xff]  ;;  %p819_p10 = por %p818_p9, %p817_p8 }
  0x47   :  { %v151_v35 = vadd.f32 %v150_v23, %v104_v11  ;;  %v158_v36 = vadd.f32 %v157_v24, %v110_v12  ;;  %v369_v52 = vmul.f32 %v710_v33, %v905_v2  ;;  %v376_v53 = vmul.f32 %v711_v34, %v907_v3  ;;  %v705_v58 = vld [vmem:[#allocation6 + $0x35] ss:$0 sm:$0xff]  ;;  %v718_v59 = vld [vmem:[#allocation6 + $0x2b] ss:$0 sm:$0xff]  ;;  %v722_v4 = vld [vmem:[#allocation6 + $0x8] ss:$0 sm:$0xff] }
  0x48   :  { %v246_v54 = vmul.f32 %v692_v39, %v240_v42  ;;  %v253_v55 = vmul.f32 %v693_v40, %v240_v42  ;;  %v288_v56 = vmax.f32 %v287_v43, 0.0  ;;  %v329_v57 = vadd.f32 %v328_v27, %v322_v44  ;;  %v723_v5 = vld [vmem:[#allocation6 + $0x14] ss:$0 sm:$0xff]  ;;  %v724_v10 = vld [vmem:[#allocation6 + $0x20] ss:$0 sm:$0xff]  ;;  %p820_p11 = pnand %p819_p10, %p813_p7 }
  0x49   :  { %v199_v48 = vadd.f32 %v198_v37, %v151_v35  ;;  %v206_v49 = vadd.f32 %v205_v38, %v158_v36  ;;  %v363_v60 = vadd.f32 %v362_v45, %v356_v32  ;;  %v404_v61 = vmul.f32 %v715_v41, %v901_v0  ;;  %v725_v15 = vld [vmem:[#allocation6 + $0x2c] ss:$0 sm:$0xff]  ;;  %v729_v16 = vld [vmem:[#allocation6 + $0x9] ss:$0 sm:$0xff]  ;;  %v730_v17 = vld [vmem:[#allocation6 + $0x15] ss:$0 sm:$0xff] }
  0x4a   :  { %v410_v62 = vmul.f32 %v716_v46, %v903_v1  ;;  %v417_v63 = vmul.f32 %v717_v47, %v905_v2  ;;  %v294_v8 = vmul.f32 %v699_v50, %v288_v56  ;;  %v301_v9 = vmul.f32 %v700_v51, %v288_v56  ;;  %v706_v20 = vld [vmem:[#allocation6 + $0x46] ss:$0 sm:$0xff]  ;;  %v707_v21 = vld [vmem:[#allocation6 + $0x47] ss:$0 sm:$0xff]  ;;  %v712_v22 = vld [vmem:[#allocation6 + $0x36] ss:$0 sm:$0xff] }
  0x4b   :  { %v247_v6 = vadd.f32 %v246_v54, %v199_v48  ;;  %v254_v7 = vadd.f32 %v253_v55, %v206_v49  ;;  %v335_v11 = vadd.f32 %v705_v58, %v329_v57  ;;  %v370_v12 = vadd.f32 %v369_v52, %v363_v60  ;;  %v731_v29 = vld [vmem:[#allocation6 + $0x21] ss:$0 sm:$0xff]  ;;  %v732_v30 = vld [vmem:[#allocation6 + $0x2d] ss:$0 sm:$0xff]  ;;  %v719_v31 = vld [vmem:[#allocation6 + $0x37] ss:$0 sm:$0xff] }
  0x4c   :  { %v411_v13 = vadd.f32 %v410_v62, %v404_v61  ;;  %v424_v14 = vmul.f32 %v718_v59, %v907_v3  ;;  %v452_v23 = vmul.f32 %v722_v4, %v901_v0  ;;  %v458_v24 = vmul.f32 %v723_v5, %v903_v1  ;;  %v736_v40 = vld [vmem:[#allocation6 + $0xa] ss:$0 sm:$0xff]  ;;  %v737_v41 = vld [vmem:[#allocation6 + $0x16] ss:$0 sm:$0xff]  ;;  %v713_v42 = vld [vmem:[#allocation6 + $0x48] ss:$0 sm:$0xff] }
  0x4d   :  { %v295_v18 = vadd.f32 %v294_v8, %v247_v6  ;;  %v302_v19 = vadd.f32 %v301_v9, %v254_v7  ;;  %v336_v25 = vmax.f32 %v335_v11, 0.0  ;;  %v377_v26 = vadd.f32 %v376_v53, %v370_v12  ;;  %v714_v43 = vld [vmem:[#allocation6 + $0x49] ss:$0 sm:$0xff]  ;;  %v738_v48 = vld [vmem:[#allocation6 + $0x22] ss:$0 sm:$0xff] }
  0x4e   :  { %v418_v27 = vadd.f32 %v417_v63, %v411_v13  ;;  %v465_v28 = vmul.f32 %v724_v10, %v905_v2  ;;  %v459_v32 = vadd.f32 %v458_v24, %v452_v23  ;;  %v472_v33 = vmul.f32 %v725_v15, %v907_v3  ;;  %v726_v53 = vld [vmem:[#allocation6 + $0x38] ss:$0 sm:$0xff]  ;;  %v739_v54 = vld [vmem:[#allocation6 + $0x2e] ss:$0 sm:$0xff]  ;;  %v720_v55 = vld [vmem:[#allocation6 + $0x4a] ss:$0 sm:$0xff] }
  0x4f   :  { %v500_v34 = vmul.f32 %v729_v16, %v901_v0  ;;  %v506_v35 = vmul.f32 %v730_v17, %v903_v1  ;;  %v342_v36 = vmul.f32 %v706_v20, %v336_v25  ;;  %v349_v37 = vmul.f32 %v707_v21, %v336_v25  ;;  %v721_v56 = vld [vmem:[#allocation6 + $0x4b] ss:$0 sm:$0xff]  ;;  %v733_v4 = vld [vmem:[#allocation6 + $0x39] ss:$0 sm:$0xff]  ;;  %v744_v11 = vld [vmem:[#allocation6 + $0x17] ss:$0 sm:$0xff] }
  0x50   :  { %v383_v38 = vadd.f32 %v712_v22, %v377_v26  ;;  %v425_v39 = vadd.f32 %v424_v14, %v418_v27  ;;  %v466_v44 = vadd.f32 %v465_v28, %v459_v32  ;;  %v513_v46 = vmul.f32 %v731_v29, %v905_v2  ;;  %v743_v6 = vld [vmem:[#allocation6 + $0xb] ss:$0 sm:$0xff]  ;;  %v745_v12 = vld [vmem:[#allocation6 + $0x23] ss:$0 sm:$0xff]  ;;  %v727_v17 = vld [vmem:[#allocation6 + $0x4c] ss:$0 sm:$0xff] }
  0x51   :  { %v507_v45 = vadd.f32 %v506_v35, %v500_v34  ;;  %v520_v47 = vmul.f32 %v732_v30, %v907_v3  ;;  %v343_v49 = vadd.f32 %v342_v36, %v295_v18  ;;  %v350_v50 = vadd.f32 %v349_v37, %v302_v19  ;;  %v728_v18 = vld [vmem:[#allocation6 + $0x4d] ss:$0 sm:$0xff]  ;;  %v746_v23 = vld [vmem:[#allocation6 + $0x2f] ss:$0 sm:$0xff]  ;;  %v734_v26 = vld [vmem:[#allocation6 + $0x4e] ss:$0 sm:$0xff] }
  0x52   :  { %v384_v51 = vmax.f32 %v383_v38, 0.0  ;;  %v431_v52 = vadd.f32 %v719_v31, %v425_v39  ;;  %v473_v57 = vadd.f32 %v472_v33, %v466_v44  ;;  %v548_v59 = vmul.f32 %v736_v40, %v901_v0  ;;  %v735_v27 = vld [vmem:[#allocation6 + $0x4f] ss:$0 sm:$0xff]  ;;  %v740_v34 = vld [vmem:[#allocation6 + $0x3a] ss:$0 sm:$0xff] }
  0x53   :  { %v514_v58 = vadd.f32 %v513_v46, %v507_v45  ;;  %v554_v60 = vmul.f32 %v737_v41, %v903_v1  ;;  %v561_v5 = vmul.f32 %v738_v48, %v905_v2  ;;  %v568_v10 = vmul.f32 %v739_v54, %v907_v3 }
  0x54   :  { %v390_v61 = vmul.f32 %v713_v42, %v384_v51  ;;  %v397_v62 = vmul.f32 %v714_v43, %v384_v51  ;;  %v432_v63 = vmax.f32 %v431_v52, 0.0  ;;  %v479_v7 = vadd.f32 %v726_v53, %v473_v57  ;;  %v741_v42 = vld [vmem:[#allocation6 + $0x50] ss:$0 sm:$0xff]  ;;  %v747_v43 = vld [vmem:[#allocation6 + $0x3b] ss:$0 sm:$0xff] }
  0x55   :  { %v521_v8 = vadd.f32 %v520_v47, %v514_v58  ;;  %v555_v9 = vadd.f32 %v554_v60, %v548_v59  ;;  %v596_v22 = vmul.f32 %v743_v6, %v901_v0  ;;  %v602_v28 = vmul.f32 %v744_v11, %v903_v1  ;;  %v742_v1 = vld [vmem:[#allocation6 + $0x51] ss:$0 sm:$0xff] }
  0x56   :  { %v391_v13 = vadd.f32 %v390_v61, %v343_v49  ;;  %v398_v14 = vadd.f32 %v397_v62, %v350_v50  ;;  %v438_v15 = vmul.f32 %v720_v55, %v432_v63  ;;  %v445_v16 = vmul.f32 %v721_v56, %v432_v63  ;;  %v748_v50 = vld [vmem:[#allocation6 + $0x52] ss:$0 sm:$0xff] }
  0x57   :  { %v480_v19 = vmax.f32 %v479_v7, 0.0  ;;  %v527_v20 = vadd.f32 %v733_v4, %v521_v8  ;;  %v562_v21 = vadd.f32 %v561_v5, %v555_v9  ;;  %v609_v29 = vmul.f32 %v745_v12, %v905_v2 }
  0x58   :  { %v439_v24 = vadd.f32 %v438_v15, %v391_v13  ;;  %v446_v25 = vadd.f32 %v445_v16, %v398_v14  ;;  %v603_v35 = vadd.f32 %v602_v28, %v596_v22  ;;  %v616_v36 = vmul.f32 %v746_v23, %v907_v3  ;;  %v749_v3 = vld [vmem:[#allocation6 + $0x53] ss:$0 sm:$0xff] }
  0x59   :  { %v486_v30 = vmul.f32 %v727_v17, %v480_v19  ;;  %v493_v31 = vmul.f32 %v728_v18, %v480_v19  ;;  %v528_v32 = vmax.f32 %v527_v20, 0.0  ;;  %v569_v33 = vadd.f32 %v568_v10, %v562_v21 }
  0x5a   :  { %v610_v41 = vadd.f32 %v609_v29, %v603_v35  ;;  %v639_v56 = vstv %s56_s1  ;;  %v642_v57 = vstv %s665_s14 }
  0x5b   :  { %v487_v37 = vadd.f32 %v486_v30, %v439_v24  ;;  %v494_v38 = vadd.f32 %v493_v31, %v446_v25  ;;  %v534_v0 = vmul.f32 %v734_v26, %v528_v32  ;;  %v541_v39 = vmul.f32 %v735_v27, %v528_v32 }
  0x5c   :  { %v575_v40 = vadd.f32 %v740_v34, %v569_v33  ;;  %v617_v46 = vadd.f32 %v616_v36, %v610_v41 }
  0x5d   :  { %v535_v2 = vadd.f32 %v534_v0, %v487_v37  ;;  %v542_v44 = vadd.f32 %v541_v39, %v494_v38 }
  0x5e   :  { %v576_v45 = vmax.f32 %v575_v40, 0.0  ;;  %v623_v49 = vadd.f32 %v747_v43, %v617_v46 }
  0x60   :  { %v582_v47 = vmul.f32 %v741_v42, %v576_v45  ;;  %v589_v48 = vmul.f32 %v742_v1, %v576_v45  ;;  %v624_v53 = vmax.f32 %v623_v49, 0.0 }
  0x62   :  { %v583_v51 = vadd.f32 %v582_v47, %v535_v2  ;;  %v590_v52 = vadd.f32 %v589_v48, %v542_v44  ;;  %v630_v54 = vmul.f32 %v748_v50, %v624_v53  ;;  %v637_v55 = vmul.f32 %v749_v3, %v624_v53 }
  0x64   :  { %v631_v58 = vadd.f32 %v630_v54, %v583_v51  ;;  %v638_v59 = vadd.f32 %v637_v55, %v590_v52 }
  0x66   :  { %v640_v60 = vadd.f32 %v639_v56, %v631_v58  ;;  %v643_v61 = vadd.f32 %v642_v57, %v638_v59 }
  0x68   :  { %641 = vst [vmem:[#allocation9] sm:$0xff] %v640_v60  ;;  %645 = vst [vmem:[#allocation9 + $0x8] sm:$0xff] %v643_v61 }
  0x69   :  { %823 = shalt.err (!%p820_p11)
}
  0x6a   :  { %s824_s20 = scalar_lea.hbm %s975_s3, 256 }
  0x6b   :  { %p825_p12 = scmp.ne.s32.totalorder %s975_s3, %s824_s20  ;;  %p828_p13 = scmp.lt.u32.totalorder %s824_s20, %s975_s3 }
  0x6d   :  { %p830_p0 = pnand %p828_p13, %p825_p12 }
  0x6f   :  { %833 = shalt.err (!%p830_p0)
}
  0x70   :  { %657 = dma.vmem_to_hbm [thread:$0]  %s652_s16, 256, %s975_s3, [#allocation4], %s843_s22, %s843_s22, %s844_s23  }
  0x71   :  { %840 = dma.done.wait [#allocation4], 256  }
  0x72   :  { %841 = vsyncadd [#allocation4], 4294967040 }
  0x73   :  { %661 = vsyncpa [#allocation3], 1 }
  0x74   :  { %662 = vsyncpa [#allocation7], 1 }
  0x75   :  { %663 = vsyncpa [#allocation4], 1 }
  0x76   :  { %664 = vsyncpa [#allocation5], 1 }

</bundles_post_ra>
